<compile_context>
chip_gen: v6e
topology: v6e:2x2x1
jax: 0.10.0
libtpu: 0.0.40
codegen_flags: <defaults>
</compile_context>

<pallas_src>
import jax
import jax.numpy as jnp
from jax.experimental import pallas as pl
from jax.experimental.pallas import tpu as pltpu

# ---- hyperparameters (small, tile-friendly, consistent with the module) ----
D_MODEL = 128
D_FF = 256
B = 2
SEQ_LEN = 8
LN_EPS = 1e-5  # PyTorch nn.LayerNorm default


# ---------------------------------------------------------------------------
# Fused position-wise FFN kernel: conv1(k=1) + ReLU + conv2(k=1) + Add & LN.
# One invocation processes all B*L positions at once (no grid).
#   x_ref  : [N, D_MODEL]  f32   (residual path)
#   w1_ref : [D_MODEL, D_FF]  bf16   (conv1 weight, [in, out])
#   w2_ref : [D_FF, D_MODEL]  bf16   (conv2 weight, [in, out])
#   p_ref  : [4, D_FF] f32 packed params:
#            row 0 = conv1 bias (D_FF)
#            row 1 = conv2 bias (D_MODEL, rest zero-padded)
#            row 2 = LN gamma   (D_MODEL, rest zero-padded)
#            row 3 = LN beta    (D_MODEL, rest zero-padded)
# ---------------------------------------------------------------------------
def ffn_kernel(x_ref, w1_ref, w2_ref, p_ref, out_ref):
    x = x_ref[...]                               # [N, D_MODEL] f32 residual

    b1 = p_ref[0:1, :]                           # [1, D_FF]
    b2 = p_ref[1:2, :D_MODEL]                    # [1, D_MODEL]
    gamma = p_ref[2:3, :D_MODEL]                 # [1, D_MODEL]
    beta = p_ref[3:4, :D_MODEL]                  # [1, D_MODEL]

    # Conv1d(kernel_size=1) == per-position Linear: bf16 operands -> MXU,
    # f32 accumulation.
    h = jnp.dot(x.astype(jnp.bfloat16), w1_ref[...],
                preferred_element_type=jnp.float32) + b1
    h = jnp.maximum(h, 0.0)                      # ReLU (f32, VPU)

    y = jnp.dot(h.astype(jnp.bfloat16), w2_ref[...],
                preferred_element_type=jnp.float32) + b2

    z = y + x                                    # residual add (f32)
    mu = jnp.mean(z, axis=-1, keepdims=True)
    var = jnp.mean((z - mu) ** 2, axis=-1, keepdims=True)
    z_norm = (z - mu) * jax.lax.rsqrt(var + LN_EPS)
    out_ref[...] = z_norm * gamma + beta


def poswise_ffn(x, params):
    """x: [B, L, D_MODEL] float32 -> [B, L, D_MODEL] float32."""
    b, l, d = x.shape
    assert d == D_MODEL
    n = b * l
    x2 = x.reshape(n, d)  # fold batch into rows: one tall MXU LHS tile

    # Whole-array VMEM mapping, no grid, no pipelining machinery.
    # NOTE: if B*L ever grows to the hundreds+, switch to a row-tiled grid
    # (dimension_semantics=("parallel",), weight index_map -> (0, 0) every
    # step so weights stay resident) to use both v7x TensorCores; at N=16 the
    # duplicated weight fetch would outweigh the gain, so we stay grid-less.
    vmem = pl.BlockSpec(memory_space=pltpu.MemorySpace.VMEM)
    out2 = pl.pallas_call(
        ffn_kernel,
        out_shape=jax.ShapeDtypeStruct((n, D_MODEL), jnp.float32),
        in_specs=[vmem, vmem, vmem, vmem],
        out_specs=vmem,
    )(x2, params["w1"], params["w2"], params["p"])
    return out2.reshape(b, l, d)


# ---------------------------------------------------------------------------
# Parameter handling: accept native PyTorch Conv1d layout and convert.
# ---------------------------------------------------------------------------
def pack_params(conv1_w, conv1_b, conv2_w, conv2_b, ln_g, ln_b):
    """conv*_w in PyTorch Conv1d layout [out_ch, in_ch, 1]; conv*_b: [out_ch]."""
    p = jnp.zeros((4, D_FF), jnp.float32)
    p = p.at[0, :].set(conv1_b.astype(jnp.float32))
    p = p.at[1, :D_MODEL].set(conv2_b.astype(jnp.float32))
    p = p.at[2, :D_MODEL].set(ln_g.astype(jnp.float32))
    p = p.at[3, :D_MODEL].set(ln_b.astype(jnp.float32))
    return dict(
        w1=jnp.transpose(conv1_w[:, :, 0]).astype(jnp.bfloat16),  # [in, out]
        w2=jnp.transpose(conv2_w[:, :, 0]).astype(jnp.bfloat16),  # [in, out]
        p=p,
    )


def init_raw_params(key):
    k1, k2, k3, k4 = jax.random.split(key, 4)
    s = 0.02
    return dict(
        conv1_w=s * jax.random.normal(k1, (D_FF, D_MODEL, 1), jnp.float32),
        conv1_b=s * jax.random.normal(k2, (D_FF,), jnp.float32),
        conv2_w=s * jax.random.normal(k3, (D_MODEL, D_FF, 1), jnp.float32),
        conv2_b=s * jax.random.normal(k4, (D_MODEL,), jnp.float32),
        ln_g=jnp.ones((D_MODEL,), jnp.float32),
        ln_b=jnp.zeros((D_MODEL,), jnp.float32),
    )


# Pure-JAX, full-fp32 reference with exact PyTorch module semantics
# (Conv1d k=1 == per-position Linear; nn.LayerNorm with biased variance).
def poswise_ffn_ref(x, raw):
    b, l, d = x.shape
    x2 = x.reshape(b * l, d)
    w1 = raw["conv1_w"][:, :, 0]                       # [d_ff, d_model]
    w2 = raw["conv2_w"][:, :, 0]                       # [d_model, d_ff]
    h = jnp.maximum(x2 @ w1.T + raw["conv1_b"], 0.0)
    y = h @ w2.T + raw["conv2_b"]
    z = y + x2
    mu = jnp.mean(z, axis=-1, keepdims=True)
    var = jnp.mean((z - mu) ** 2, axis=-1, keepdims=True)
    out = (z - mu) * jax.lax.rsqrt(var + LN_EPS) * raw["ln_g"] + raw["ln_b"]
    return out.reshape(b, l, d)


if __name__ == "__main__":
    root = jax.random.PRNGKey(0)
    k_p, k_x = jax.random.split(root, 2)

    raw = init_raw_params(k_p)
    params = pack_params(**raw)
    x = jax.random.normal(k_x, (B, SEQ_LEN, D_MODEL), jnp.float32)

    out = poswise_ffn(x, params)
    jax.block_until_ready(out)

    assert out.shape == (B, SEQ_LEN, D_MODEL)
    assert bool(jnp.all(jnp.isfinite(out)))

    # Compare against the true fp32 PyTorch-semantics reference (bf16 matmul
    # operands in the kernel give ~1e-3-level drift at these scales).
    ref = poswise_ffn_ref(x, raw)
    assert bool(jnp.allclose(out, ref, atol=2e-2, rtol=2e-2))

    print("KERNEL_OK")
</pallas_src>

<mosaic_0001>
module attributes {stable_mosaic.version = 11 : i64} {
  func.func @ffn_kernel(%arg0: memref<16x128xf32, #tpu.memory_space<vmem>>, %arg1: memref<128x256xbf16, #tpu.memory_space<vmem>>, %arg2: memref<256x128xbf16, #tpu.memory_space<vmem>>, %arg3: memref<4x256xf32, #tpu.memory_space<vmem>>, %arg4: memref<16x128xf32, #tpu.memory_space<vmem>>) attributes {dimension_semantics = [], scalar_prefetch = 0 : i64, scratch_operands = 0 : i64, tpu.core_type = #tpu.core_type<tc>} {
    %c0 = arith.constant 0 : index
    %c0_0 = arith.constant 0 : index
    %0 = vector.load %arg0[%c0, %c0_0] : memref<16x128xf32, #tpu.memory_space<vmem>>, vector<16x128xf32>
    %c0_1 = arith.constant 0 : index
    %c0_2 = arith.constant 0 : index
    %1 = vector.load %arg3[%c0_1, %c0_2] : memref<4x256xf32, #tpu.memory_space<vmem>>, vector<1x256xf32>
    %c1 = arith.constant 1 : index
    %c0_3 = arith.constant 0 : index
    %2 = vector.load %arg3[%c1, %c0_3] : memref<4x256xf32, #tpu.memory_space<vmem>>, vector<1x128xf32>
    %c2 = arith.constant 2 : index
    %c0_4 = arith.constant 0 : index
    %3 = vector.load %arg3[%c2, %c0_4] : memref<4x256xf32, #tpu.memory_space<vmem>>, vector<1x128xf32>
    %c3 = arith.constant 3 : index
    %c0_5 = arith.constant 0 : index
    %4 = vector.load %arg3[%c3, %c0_5] : memref<4x256xf32, #tpu.memory_space<vmem>>, vector<1x128xf32>
    %5 = arith.truncf %0 : vector<16x128xf32> to vector<16x128xbf16>
    %c0_6 = arith.constant 0 : index
    %c0_7 = arith.constant 0 : index
    %6 = vector.load %arg1[%c0_6, %c0_7] : memref<128x256xbf16, #tpu.memory_space<vmem>>, vector<128x256xbf16>
    %cst = arith.constant dense<0.000000e+00> : vector<16x256xf32>
    %7 = tpu.matmul %5, %6, %cst {dimension_numbers = #tpu.dot_dimension_numbers<[1], [0], [0], [1], [0, 0, 1, 1], [], []>} : vector<16x128xbf16>, vector<128x256xbf16>, vector<16x256xf32> -> vector<16x256xf32>
    %8 = vector.broadcast %1 : vector<1x256xf32> to vector<16x256xf32>
    %9 = arith.addf %7, %8 : vector<16x256xf32>
    %cst_8 = arith.constant 0.000000e+00 : f32
    %10 = vector.broadcast %cst_8 : f32 to vector<16x256xf32>
    %11 = arith.maximumf %9, %10 : vector<16x256xf32>
    %12 = arith.truncf %11 : vector<16x256xf32> to vector<16x256xbf16>
    %c0_9 = arith.constant 0 : index
    %c0_10 = arith.constant 0 : index
    %13 = vector.load %arg2[%c0_9, %c0_10] : memref<256x128xbf16, #tpu.memory_space<vmem>>, vector<256x128xbf16>
    %cst_11 = arith.constant dense<0.000000e+00> : vector<16x128xf32>
    %14 = tpu.matmul %12, %13, %cst_11 {dimension_numbers = #tpu.dot_dimension_numbers<[1], [0], [0], [1], [0, 0, 1, 1], [], []>} : vector<16x256xbf16>, vector<256x128xbf16>, vector<16x128xf32> -> vector<16x128xf32>
    %15 = vector.broadcast %2 : vector<1x128xf32> to vector<16x128xf32>
    %16 = arith.addf %14, %15 : vector<16x128xf32>
    %17 = arith.addf %16, %0 : vector<16x128xf32>
    %cst_12 = arith.constant dense<0.000000e+00> : vector<16xf32>
    %18 = vector.multi_reduction <add>, %17, %cst_12 [1] : vector<16x128xf32> to vector<16xf32>
    %19 = vector.shape_cast %18 : vector<16xf32> to vector<16x1xf32>
    %cst_13 = arith.constant 1.280000e+02 : f32
    %20 = vector.broadcast %cst_13 : f32 to vector<16x1xf32>
    %21 = arith.divf %19, %20 : vector<16x1xf32>
    %22 = vector.broadcast %21 : vector<16x1xf32> to vector<16x128xf32>
    %23 = arith.subf %17, %22 : vector<16x128xf32>
    %24 = arith.mulf %23, %23 : vector<16x128xf32>
    %cst_14 = arith.constant dense<0.000000e+00> : vector<16xf32>
    %25 = vector.multi_reduction <add>, %24, %cst_14 [1] : vector<16x128xf32> to vector<16xf32>
    %26 = vector.shape_cast %25 : vector<16xf32> to vector<16x1xf32>
    %cst_15 = arith.constant 1.280000e+02 : f32
    %27 = vector.broadcast %cst_15 : f32 to vector<16x1xf32>
    %28 = arith.divf %26, %27 : vector<16x1xf32>
    %29 = vector.broadcast %21 : vector<16x1xf32> to vector<16x128xf32>
    %30 = arith.subf %17, %29 : vector<16x128xf32>
    %cst_16 = arith.constant 9.99999974E-6 : f32
    %31 = vector.broadcast %cst_16 : f32 to vector<16x1xf32>
    %32 = arith.addf %28, %31 : vector<16x1xf32>
    %33 = math.rsqrt %32 : vector<16x1xf32>
    %34 = vector.broadcast %33 : vector<16x1xf32> to vector<16x128xf32>
    %35 = arith.mulf %30, %34 : vector<16x128xf32>
    %36 = vector.broadcast %3 : vector<1x128xf32> to vector<16x128xf32>
    %37 = arith.mulf %35, %36 : vector<16x128xf32>
    %38 = vector.broadcast %4 : vector<1x128xf32> to vector<16x128xf32>
    %39 = arith.addf %37, %38 : vector<16x128xf32>
    %c0_17 = arith.constant 0 : index
    %c0_18 = arith.constant 0 : index
    %40 = vector.load %arg4[%c0_17, %c0_18] : memref<16x128xf32, #tpu.memory_space<vmem>>, vector<16x128xf32>
    tpu.vector_store %arg4[%c0_17, %c0_18], %39 {strides = array<i32>} : memref<16x128xf32, #tpu.memory_space<vmem>>, vector<16x128xf32>,
    return
  }
}

</mosaic_0001>

<bundles_post_ra>
// kernel: tpu_custom_call.1
= control target key start
LH: loop header
LB: loop body
LE: loop exit
PB: predicated region body
PF: predicated region fallthrough
CT: control target
= control target key end

     0   :  { %9 = vsyncpa [#allocation3], 0  ;;  %s744_s0 = inlined_call_operand.hbm [shape: f32[16,128], index: 0, kind: input, shape index: {}]   ;;  %s745_s1 = inlined_call_operand.hbm [shape: bf16[128,256], index: 1, kind: input, shape index: {}]   ;;  %s746_s2 = inlined_call_operand.hbm [shape: bf16[256,128], index: 2, kind: input, shape index: {}]   ;;  %s747_s3 = inlined_call_operand.hbm [shape: f32[4,256], index: 3, kind: input, shape index: {}]   ;;  %s748_s4 = inlined_call_operand.hbm [shape: f32[16,128], index: 4, kind: output, shape index: {}]  }
   0x1   :  { %10 = vsyncpa [#allocation6], 0 }
   0x2   :  { %11 = vsyncpa [#allocation9], 0 }
   0x3   :  { %12 = vsyncpa [#allocation4], 0  ;;  %s685_s15 = smov [#allocation5]   ;;  %s686_s17 = smov [#allocation2]  }
   0x4   :  { %s30_s16 = sshll.u32 %s685_s15, 4  ;;  %s18_s18 = sshll.u32 %s686_s17, 4  ;;  %s31_s16 = int_to_ptr.vmem [resolvable:$true] %s30_s16  ;;  %s19_s18 = int_to_ptr.vmem [resolvable:$true] %s18_s18 }
   0x5   :  { %s585_s19 = scalar_lea.vmem %s31_s16, 2048  ;;  %p590_p1 = scmp.lt.s32.totalorder %s31_s16, %s31_s16 }
   0x6   :  { %p586_p0 = scmp.ne.s32.totalorder %s31_s16, %s585_s19  ;;  %p591_p2 = scmp.lt.s32.totalorder %s585_s19, %s585_s19 }
   0x8   :  { %p592_p3 = por %p591_p2, %p590_p1 }
   0xa   :  { %p593_p4 = pnand %p592_p3, %p586_p0 }
   0xc   :  { %596 = shalt.err (!%p593_p4)
}
   0xd   :  { %s687_s20 = smov 128   ;;  %s688_s21 = smov 8  }
   0xe   :  { %36 = dma.hbm_to_vmem [thread:$0]  %s745_s1, 2048, %s31_s16, [#allocation6], %s687_s20, %s687_s20, %s688_s21  }
   0xf   :  { %s605_s24 = scalar_lea.vmem %s19_s18, 256  ;;  %p610_p6 = scmp.lt.s32.totalorder %s19_s18, %s19_s18 }
  0x10   :  { %p606_p5 = scmp.ne.s32.totalorder %s19_s18, %s605_s24  ;;  %p611_p7 = scmp.lt.s32.totalorder %s605_s24, %s605_s24 }
  0x12   :  { %p612_p8 = por %p611_p7, %p610_p6 }
  0x14   :  { %p613_p9 = pnand %p612_p8, %p606_p5 }
  0x16   :  { %616 = shalt.err (!%p613_p9)
}
  0x17   :  { %24 = dma.hbm_to_vmem [thread:$0]  %s744_s0, 256, %s19_s18, [#allocation3], %s687_s20, %s687_s20, %s688_s21  }
  0x18   :  { %s689_s27 = smov [#allocation7]  }
  0x19   :  { %s42_s28 = sshll.u32 %s689_s27, 4  ;;  %s43_s28 = int_to_ptr.vmem [resolvable:$true] %s42_s28 }
  0x1a   :  { %s625_s29 = scalar_lea.vmem %s43_s28, 2048  ;;  %p630_p11 = scmp.lt.s32.totalorder %s43_s28, %s43_s28 }
  0x1b   :  { %p626_p10 = scmp.ne.s32.totalorder %s43_s28, %s625_s29  ;;  %p631_p12 = scmp.lt.s32.totalorder %s625_s29, %s625_s29 }
  0x1d   :  { %p632_p13 = por %p631_p12, %p630_p11 }
  0x1f   :  { %p633_p0 = pnand %p632_p13, %p626_p10 }
  0x21   :  { %636 = shalt.err (!%p633_p0)
}
  0x22   :  { %s690_s1 = smov 64   ;;  %s691_s30 = smov 4  }
  0x23   :  { %48 = dma.hbm_to_vmem [thread:$0]  %s746_s2, 2048, %s43_s28, [#allocation6], %s690_s1, %s690_s1, %s691_s30  }
  0x24   :  { %s692_s7 = smov [#allocation8]  }
  0x25   :  { %s55_s8 = sshll.u32 %s692_s7, 4  ;;  %s56_s8 = int_to_ptr.vmem [resolvable:$true] %s55_s8 }
  0x26   :  { %s645_s0 = scalar_lea.vmem %s56_s8, 128  ;;  %p650_p2 = scmp.lt.s32.totalorder %s56_s8, %s56_s8 }
  0x27   :  { %p646_p1 = scmp.ne.s32.totalorder %s56_s8, %s645_s0  ;;  %p651_p3 = scmp.lt.s32.totalorder %s645_s0, %s645_s0 }
  0x29   :  { %p652_p4 = por %p651_p3, %p650_p2 }
  0x2b   :  { %p653_p5 = pnand %p652_p4, %p646_p1 }
  0x2d   :  { %656 = shalt.err (!%p653_p5)
}
  0x2e   :  { %58 = dma.hbm_to_vmem [thread:$0]  %s747_s3, 128, %s56_s8, [#allocation9]  }
  0x2f   :  { %677 = dma.done.wait [#allocation3], 256  }
  0x30   :  { %678 = vsyncadd [#allocation3], 4294967040 }
  0x31   :  { %679 = dma.done.wait [#allocation6], 4096  }
  0x32   :  { %680 = vsyncadd [#allocation6], 4294963200 }
  0x33   :  { %681 = dma.done.wait [#allocation9], 128  }
  0x34   :  { %682 = vsyncadd [#allocation9], 4294967168  ;;  %v693_v0 = vmov 0   ;;  %v533_v1 = vld [vmem:[#allocation5 + $0x74] ss:$8 sps:$4 sm:$0xff]   ;;  %v561_v16 = vld [vmem:[#allocation7 + $0x68] sm:$0xff]   ;;  %v96_v36 = vlaneseq }
  0x35   :  { %218 = vmatprep.mubr.bf16.mxu0 %v693_v0  ;;  %v535_v2 = vld [vmem:[#allocation5 + $0x70] ss:$8 sps:$4 sm:$0xff]   ;;  %186 = vmatprep.subr.bf16.mxu0 %v533_v1  ;;  %v536_v3 = vld [vmem:[#allocation5 + $0x64] ss:$8 sps:$4 sm:$0xff]   ;;  %v538_v4 = vld [vmem:[#allocation5 + $0x60] ss:$8 sps:$4 sm:$0xff]  }
  0x36   :  { %187 = vmatpush1.bf16.msra.mxu0 %v535_v2  ;;  %v539_v5 = vld [vmem:[#allocation5 + $0x54] ss:$8 sps:$4 sm:$0xff]   ;;  %v541_v6 = vld [vmem:[#allocation5 + $0x50] ss:$8 sps:$4 sm:$0xff]   ;;  %v542_v7 = vld [vmem:[#allocation5 + $0x44] ss:$8 sps:$4 sm:$0xff]  }
  0x37   :  { %188 = vmatprep.subr.bf16.mxu0 %v536_v3  ;;  %v544_v8 = vld [vmem:[#allocation5 + $0x40] ss:$8 sps:$4 sm:$0xff]   ;;  %v545_v9 = vld [vmem:[#allocation5 + $0x34] ss:$8 sps:$4 sm:$0xff]   ;;  %v547_v11 = vld [vmem:[#allocation5 + $0x30] ss:$8 sps:$4 sm:$0xff]  }
  0x38   :  { %v557_v10 = vld [vmem:[#allocation7 + $0x78] sm:$0xff]   ;;  %v548_v13 = vld [vmem:[#allocation5 + $0x24] ss:$8 sps:$4 sm:$0xff]   ;;  %v559_v14 = vld [vmem:[#allocation7 + $0x70] sm:$0xff]   ;;  %v97_v37 = vshrl.u32 %v96_v36, 7  ;;  %s694_s2 = smov [#allocation10]  }
  0x39   :  { %v558_v12 = vld [vmem:[#allocation7 + $0x38] sm:$0xff]   ;;  %501 = vmatprep.subr.bf16.mxu1 %v557_v10  ;;  %v560_v15 = vld [vmem:[#allocation7 + $0x30] sm:$0xff]   ;;  %v550_v17 = vld [vmem:[#allocation5 + $0x20] ss:$8 sps:$4 sm:$0xff]   ;;  %s452_s3 = sshll.u32 %s694_s2, 4  ;;  %s453_s3 = int_to_ptr.vmem [resolvable:$true] %s452_s3 }
  0x3a   :  { %189 = vmatpush1.bf16.msra.mxu0 %v538_v4  ;;  %502 = vmatpush3.bf16.msra.mxu1 %v558_v12  ;;  %v551_v18 = vld [vmem:[#allocation5 + $0x14] ss:$8 sps:$4 sm:$0xff]   ;;  %v562_v19 = vld [vmem:[#allocation7 + $0x28] sm:$0xff]   ;;  %v563_v20 = vld [vmem:[#allocation7 + $0x60] sm:$0xff]   ;;  %v102_v38 = vsub.s32 1, %v97_v37  ;;  %v98_v39 = vsub.s32 0, %v97_v37  ;;  %p662_p7 = scmp.lt.s32.totalorder %s453_s3, %s453_s3 }
  0x3b   :  { %190 = vmatprep.subr.bf16.mxu0 %v539_v5  ;;  %503 = vmatprep.subr.bf16.mxu1 %v559_v14  ;;  %v553_v21 = vld [vmem:[#allocation5 + $0x10] ss:$8 sps:$4 sm:$0xff]   ;;  %v564_v22 = vld [vmem:[#allocation7 + $0x20] sm:$0xff]   ;;  %v569_v32 = vld [vmem:[#allocation7 + $0x48] sm:$0xff]   ;;  %s657_s11 = scalar_lea.vmem %s453_s3, 256 }
  0x3c   :  { %v554_v23 = vld [vmem:[#allocation5 + $0x4] ss:$8 sps:$4 sm:$0xff]   ;;  %v565_v24 = vld [vmem:[#allocation7 + $0x58] sm:$0xff]   ;;  %v556_v25 = vld [vmem:[#allocation5] ss:$8 sps:$4 sm:$0xff]   ;;  %p658_p6 = scmp.ne.s32.totalorder %s453_s3, %s657_s11  ;;  %p663_p8 = scmp.lt.s32.totalorder %s657_s11, %s657_s11 }
  0x3d   :  { %v72_v26 = vld [vmem:[#allocation2] sm:$0xff]  ;;  %v73_v27 = vld [vmem:[#allocation2 + $0x8] sm:$0xff]  ;;  %v570_v33 = vld [vmem:[#allocation7 + $0x8] sm:$0xff]  }
  0x3e   :  { %191 = vmatpush1.bf16.msra.mxu0 %v541_v6  ;;  %504 = vmatpush3.bf16.msra.mxu1 %v560_v15  ;;  %v566_v28 = vld [vmem:[#allocation7 + $0x18] sm:$0xff]   ;;  %v78_v29 = vpack.c.bf16 %v73_v27, %v72_v26  ;;  %v567_v30 = vld [vmem:[#allocation7 + $0x50] sm:$0xff]   ;;  %v571_v34 = vld [vmem:[#allocation7 + $0x40] sm:$0xff]   ;;  %p664_p9 = por %p663_p8, %p662_p7 }
  0x3f   :  { %192 = vmatprep.subr.bf16.mxu0 %v542_v7  ;;  %505 = vmatprep.subr.bf16.mxu1 %v561_v16  ;;  %v568_v31 = vld [vmem:[#allocation7 + $0x10] sm:$0xff]   ;;  %v572_v35 = vld [vmem:[#allocation7] sm:$0xff]  }
  0x40   :  { %v74_v40 = vld [vmem:[#allocation8] ss:$4 sm:$0x3]  ;;  %v482_v58 = vld [vmem:[#allocation8 + $0x1] ss:$0 sm:$0xff]  ;;  %p665_p10 = pnand %p664_p9, %p658_p6 }
  0x41   :  { %v103_v42 = vrot.slane %v74_v40, %v102_v38  ;;  %v99_v43 = vrot.slane %v74_v40, %v98_v39 }
  0x42   :  { %193 = vmatpush1.bf16.msra.mxu0 %v544_v8  ;;  %506 = vmatpush3.bf16.msra.mxu1 %v562_v19  ;;  %v499_v19 = vld [vmem:[#allocation8 + $0x2] ss:$0 sm:$0xff] }
  0x43   :  { %194 = vmatprep.subr.bf16.mxu0 %v545_v9  ;;  %507 = vmatprep.subr.bf16.mxu1 %v563_v20 }
  0x46   :  { %195 = vmatpush1.bf16.msra.mxu0 %v547_v11  ;;  %508 = vmatpush3.bf16.msra.mxu1 %v564_v22 }
  0x47   :  { %196 = vmatprep.subr.bf16.mxu0 %v548_v13  ;;  %509 = vmatprep.subr.bf16.mxu1 %v565_v24 }
  0x4a   :  { %197 = vmatpush1.bf16.msra.mxu0 %v550_v17  ;;  %510 = vmatpush3.bf16.msra.mxu1 %v566_v28 }
  0x4b   :  { %198 = vmatprep.subr.bf16.mxu0 %v551_v18  ;;  %511 = vmatprep.subr.bf16.mxu1 %v567_v30 }
  0x4e   :  { %199 = vmatpush1.bf16.msra.mxu0 %v553_v21  ;;  %512 = vmatpush3.bf16.msra.mxu1 %v568_v31  ;;  %v500_v21 = vld [vmem:[#allocation8 + $0x3] ss:$0 sm:$0xff] }
  0x4f   :  { %200 = vmatprep.subr.bf16.mxu0 %v554_v23  ;;  %513 = vmatprep.subr.bf16.mxu1 %v569_v32 }
  0x52   :  { %201 = vmatpush1.bf16.msra.mxu0 %v556_v25  ;;  %514 = vmatpush3.bf16.msra.mxu1 %v570_v33 }
  0x53   :  { %515 = vmatprep.subr.bf16.mxu1 %v571_v34 }
  0x55   :  { %219 = vmatmul.mubr.bf16.vlgmr.msra.gmra.mxu0 %v78_v29 }
  0x56   :  { %516 = vmatpush3.bf16.msra.mxu1 %v572_v35 }
 0x115   :  { %v220_v41 = vpop.f32.mrf.mxu0 }
 0x116   :  { %v221_v48 = vadd.f32 %v220_v41, %v99_v43 }
 0x117   :  { %v222_v44 = vpop.f32.mrf.mxu0 }
 0x118   :  { %v223_v46 = vadd.f32 %v222_v44, %v103_v42  ;;  %v229_v54 = vmax.f32 %v221_v48, 0.0 }
 0x119   :  { %v224_v45 = vpop.f32.mrf.mxu0 }
 0x11a   :  { %v225_v47 = vadd.f32 %v224_v45, %v99_v43  ;;  %v230_v52 = vmax.f32 %v223_v46, 0.0 }
 0x11b   :  { %v226_v49 = vpop.f32.mrf.mxu0 }
 0x11c   :  { %v227_v50 = vadd.f32 %v226_v49, %v103_v42  ;;  %v231_v51 = vmax.f32 %v225_v47, 0.0 }
 0x11e   :  { %v232_v53 = vmax.f32 %v227_v50, 0.0  ;;  %v233_v56 = vpack.c.bf16 %v231_v51, %v229_v54 }
 0x120   :  { %v234_v55 = vpack.c.bf16 %v232_v53, %v230_v52 }
 0x122   :  { %399 = vmatprep.mubr.bf16.mxu1 %v234_v55 }
 0x123   :  { %400 = vmatmul.mubr.bf16.vlgmr.msra.gmra.mxu1 %v233_v56 }
 0x1e3   :  { %v517_v57 = vpop.f32.mrf.mxu1 }
 0x1e5   :  { %v518_v59 = vpop.f32.mrf.mxu1 }
 0x1e6   :  { %v519_v60 = vadd.f32 %v518_v59, %v517_v57 }
 0x1e7   :  { %v520_v61 = vpop.f32.mrf.mxu1 }
 0x1e8   :  { %v402_v62 = vadd.f32 %v519_v60, %v482_v58 }
 0x1e9   :  { %v521_v63 = vpop.f32.mrf.mxu1 }
 0x1ea   :  { %v522_v0 = vadd.f32 %v521_v63, %v520_v61  ;;  %v408_v1 = vadd.f32 %v402_v62, %v72_v26 }
 0x1ec   :  { %v405_v2 = vadd.f32 %v522_v0, %v482_v58  ;;  %410 = vadd.xlane.f32.xlu0 %v408_v1 }
 0x1ee   :  { %v409_v3 = vadd.f32 %v405_v2, %v73_v27 }
 0x1f0   :  { %412 = vadd.xlane.f32.xlu0 %v409_v3 }
 0x275   :  { %v411_v4 = vpop.xlane.xlu0 %410 }
 0x276   :  { %v415_v5 = vmul.f32 0.0078125, %v411_v4 }
 0x278   :  { %v417_v6 = vsub.f32 %v408_v1, %v415_v5 }
 0x279   :  { %v413_v7 = vpop.xlane.xlu0 %412 }
 0x27a   :  { %v416_v8 = vmul.f32 0.0078125, %v413_v7  ;;  %v419_v9 = vmul.f32 %v417_v6, %v417_v6 }
 0x27c   :  { %v418_v10 = vsub.f32 %v409_v3, %v416_v8  ;;  %421 = vadd.xlane.f32.xlu1 %v419_v9 }
 0x27e   :  { %v420_v11 = vmul.f32 %v418_v10, %v418_v10 }
 0x280   :  { %423 = vadd.xlane.f32.xlu1 %v420_v11 }
 0x305   :  { %v422_v12 = vpop.xlane.xlu1 %421 }
 0x306   :  { %v425_v13 = vmul.f32 0.0078125, %v422_v12 }
 0x308   :  { %v427_v14 = vadd.f32 1e-05, %v425_v13 }
 0x309   :  { %v424_v15 = vpop.xlane.xlu1 %423 }
 0x30a   :  { %573 = vrsqrt.f32 %v427_v14  ;;  %v426_v16 = vmul.f32 0.0078125, %v424_v15 }
 0x30c   :  { %v428_v17 = vadd.f32 1e-05, %v426_v16 }
 0x30e   :  { %575 = vrsqrt.f32 %v428_v17 }
 0x317   :  { %v574_v18 = vpop.eup %573 }
 0x318   :  { %v431_v20 = vmul.f32 %v574_v18, %v417_v6 }
 0x31a   :  { %v437_v22 = vmul.f32 %v499_v19, %v431_v20 }
 0x31b   :  { %v576_v23 = vpop.eup %575 }
 0x31c   :  { %v432_v24 = vmul.f32 %v576_v23, %v418_v10  ;;  %v443_v25 = vadd.f32 %v500_v21, %v437_v22 }
 0x31e   :  { %v438_v26 = vmul.f32 %v499_v19, %v432_v24  ;;  %445 = vst [vmem:[#allocation10] sm:$0xff] %v443_v25 }
 0x320   :  { %v444_v27 = vadd.f32 %v500_v21, %v438_v26 }
 0x322   :  { %446 = vst [vmem:[#allocation10 + $0x8] sm:$0xff] %v444_v27 }
 0x323   :  { %668 = shalt.err (!%p665_p10)
}
 0x324   :  { %458 = dma.vmem_to_hbm [thread:$0]  %s453_s3, 256, %s748_s4, [#allocation4], %s687_s20, %s687_s20, %s688_s21  }
 0x325   :  { %683 = dma.done.wait [#allocation4], 256  }
 0x326   :  { %684 = vsyncadd [#allocation4], 4294967040 }
 0x327   :  { %462 = vsyncpa [#allocation3], 1 }
 0x328   :  { %463 = vsyncpa [#allocation6], 1 }
 0x329   :  { %464 = vsyncpa [#allocation9], 1 }
 0x32a   :  { %465 = vsyncpa [#allocation4], 1 }

</bundles_post_ra>
